<compile_context>
chip_gen: v6e
topology: v6e:2x2x1
jax: 0.10.0
libtpu: 0.0.40
codegen_flags: <defaults>
</compile_context>

<pallas_src>
import functools

import jax
import jax.numpy as jnp
from jax import lax
from jax.experimental import pallas as pl
from jax.experimental.pallas import tpu as pltpu


# ----------------------------- kernel body -----------------------------------

def _cln_kernel(x_ref, w_ref, b_ref, o_ref, *, epsilon, inv_h):
    # x_ref: (bt, ts, H); w_ref/b_ref: (bt, 1, H) float32; o_ref: (bt, ts, H).
    # Pass 1: mean via f32-accumulated lane reduction (no stored f32 tile copy).
    mean = jnp.sum(x_ref[...], axis=-1, keepdims=True, dtype=jnp.float32) * inv_h
    # Pass 2: centered values, variance of centered values (matches the PyTorch
    # two-pass unbiased=False variance; no cancellation, no clamp needed).
    centered = x_ref[...].astype(jnp.float32) - mean
    var = jnp.sum(centered * centered, axis=-1, keepdims=True) * inv_h
    inv_std = lax.rsqrt(var + epsilon)  # EUP
    o_ref[...] = (centered * inv_std * w_ref[...] + b_ref[...]).astype(o_ref.dtype)


# ----------------------------- tiling policy ----------------------------------

def _device_config():
    """Generation-aware block / VMEM / grid sizing."""
    vmem_phys = 128 << 20
    try:
        info = pltpu.get_tpu_info()
        vmem_phys = getattr(info, "vmem_capacity_bytes", vmem_phys) or vmem_phys
    except Exception:
        pass
    if vmem_phys <= (64 << 20):
        # v7x-class: 64 MiB physical VMEM, 2 TensorCores -> want >=16 grid steps.
        return dict(target_block_bytes=6 << 20, vmem_limit_bytes=48 << 20, min_steps=16)
    # v5e / v6e: 128 MiB physical VMEM, single TensorCore.
    return dict(target_block_bytes=12 << 20, vmem_limit_bytes=96 << 20, min_steps=8)


def _largest_divisor_leq(n, limit, multiple_of=1):
    """Largest d with d | n, d <= limit, d % multiple_of == 0 (or None)."""
    best = None
    d = 1
    while d * d <= n:
        if n % d == 0:
            for c in (d, n // d):
                if c <= limit and c % multiple_of == 0 and (best is None or c > best):
                    best = c
        d += 1
    return best


def _pick_tiles(B, S, H, dtype_bytes, target_block_bytes, min_steps):
    """Choose (bt, ts, pad_s): divisor-based tiles, no padding in the common case."""
    sub = max(8, 32 // dtype_bytes)          # sublane pack: 8 f32 / 16 bf16 / 32 int8
    row_bytes = H * dtype_bytes
    rows_by_bytes = max(sub, target_block_bytes // row_bytes)
    rows_by_steps = max(sub, (B * S) // min_steps)   # keep the grid >= min_steps
    max_rows = min(rows_by_bytes, rows_by_steps)

    # Sequence tile: prefer a divisor of S that is a multiple of the sublane pack
    # (so the (8,128) block constraint holds without padding); else take full S.
    ts = _largest_divisor_leq(S, max_rows, multiple_of=sub)
    pad_s = 0
    if ts is None:
        if S <= max_rows:
            ts = S                            # block dim == full array dim: always legal
        else:
            # Rare fallback: S large and with no sub-aligned divisor -> pad S only.
            ts = max(sub, (max_rows // sub) * sub)
            pad_s = (-S) % ts

    # Batch tile: only fold batch when a whole sequence fits one tile, keeping
    # enough grid steps for pipelining / dual-TC sharding; bt always divides B.
    bt = 1
    if ts == S and pad_s == 0:
        cap = max(1, max_rows // ts)
        limit = min(cap, B // min_steps) if min_steps > 0 else cap
        bt = _largest_divisor_leq(B, limit, multiple_of=1) or 1
    return bt, ts, pad_s


# ----------------------------- public wrapper ---------------------------------

def conditional_layer_norm(x, condition, params, *, epsilon=1e-5):
    """x: (B, S, H); condition: (B, C). Returns (B, S, H) in x.dtype."""
    B, S, H = x.shape

    # --- condition-side linears (tiny GEMMs) in plain JAX glue, float32 ---
    cond = condition.astype(jnp.float32)
    if params.get("cond_W") is not None:
        cond = cond @ params["cond_W"].T + params["cond_b"]
    weight = (cond @ params["weight_W"].T + params["weight_b"])[:, None, :]  # (B,1,H) f32
    bias = (cond @ params["bias_W"].T + params["bias_b"])[:, None, :]        # (B,1,H) f32

    cfg = _device_config()
    dtype_bytes = jnp.dtype(x.dtype).itemsize
    bt, ts, pad_s = _pick_tiles(B, S, H, dtype_bytes,
                                cfg["target_block_bytes"], cfg["min_steps"])
    Sp = S + pad_s
    if pad_s:
        # Rare fallback only (S has no sub-aligned divisor and doesn't fit one
        # block).  Padded rows are zeros -> finite output, sliced off below.
        x = jnp.pad(x, ((0, 0), (0, pad_s), (0, 0)))

    grid = (B // bt, Sp // ts)
    kernel = functools.partial(_cln_kernel, epsilon=float(epsilon), inv_h=1.0 / H)

    out = pl.pallas_call(
        kernel,
        out_shape=jax.ShapeDtypeStruct((B, Sp, H), x.dtype),
        grid_spec=pltpu.PrefetchScalarGridSpec(
            num_scalar_prefetch=0,
            grid=grid,
            in_specs=[
                pl.BlockSpec((bt, ts, H), lambda b, s: (b, s, 0)),
                # weight/bias blocks depend only on b -> re-used (no re-DMA)
                # across all s steps of a batch tile.
                pl.BlockSpec((bt, 1, H), lambda b, s: (b, 0, 0)),
                pl.BlockSpec((bt, 1, H), lambda b, s: (b, 0, 0)),
            ],
            out_specs=pl.BlockSpec((bt, ts, H), lambda b, s: (b, s, 0)),
        ),
        compiler_params=pltpu.CompilerParams(
            dimension_semantics=("parallel", "parallel"),
            vmem_limit_bytes=cfg["vmem_limit_bytes"],
        ),
        cost_estimate=pl.CostEstimate(
            flops=8 * B * Sp * H,
            transcendentals=B * Sp,
            bytes_accessed=2 * B * Sp * H * dtype_bytes + 4 * B * H * 4,
        ),
    )(x, weight, bias)

    if pad_s:
        out = out[:, :S, :]
    return out


# ----------------------------- reference & test --------------------------------

def _reference(x, condition, params, epsilon):
    cond = condition.astype(jnp.float32)
    if params.get("cond_W") is not None:
        cond = cond @ params["cond_W"].T + params["cond_b"]
    xf = x.astype(jnp.float32)
    mean = jnp.mean(xf, axis=-1, keepdims=True)
    var = jnp.mean((xf - mean) ** 2, axis=-1, keepdims=True)  # unbiased=False
    xn = (xf - mean) / jnp.sqrt(var + epsilon)
    w = (cond @ params["weight_W"].T + params["weight_b"])[:, None, :]
    b = (cond @ params["bias_W"].T + params["bias_b"])[:, None, :]
    return (xn * w + b).astype(x.dtype)


def _make_params(key, H, C, CH):
    # Linear weights are (out, in), matching the module's __init__.
    # NOTE: reset_parameters() would set weight_transform to (W=0, b=1) and
    # bias_transform to (W=0, b=0); small random values are used here so the
    # conditional scale/shift path is actually exercised.
    k1, k2, k3, k4 = jax.random.split(key, 4)
    return {
        "cond_W": 0.1 * jax.random.normal(k1, (CH, C), dtype=jnp.float32),
        "cond_b": 0.1 * jax.random.normal(k2, (CH,), dtype=jnp.float32),
        "weight_W": 0.1 * jax.random.normal(k3, (H, CH), dtype=jnp.float32),
        "weight_b": jnp.ones((H,), dtype=jnp.float32),
        "bias_W": 0.1 * jax.random.normal(k4, (H, CH), dtype=jnp.float32),
        "bias_b": jnp.zeros((H,), dtype=jnp.float32),
    }


if __name__ == "__main__":
    eps = 1e-5
    key = jax.random.PRNGKey(0)

    tests = [
        # (B, S, H, C, CH, dtype, atol)  — small shapes, covering:
        (2, 8, 32, 16, 24, jnp.float32, 1e-5),    # spec-scale single-tile case
        (2, 64, 48, 16, 24, jnp.bfloat16, 5e-2),  # bf16 input, multi-step grid along S
        (32, 12, 32, 16, 24, jnp.float32, 1e-5),  # bt>1 batch folding, ts == full S (not %8)
    ]
    for (B, S, H, C, CH, dt, atol) in tests:
        key, kx, kc, kp = jax.random.split(key, 4)
        x = (jax.random.normal(kx, (B, S, H), dtype=jnp.float32) + 0.5).astype(dt)
        condition = jax.random.normal(kc, (B, C), dtype=jnp.float32)
        params = _make_params(kp, H, C, CH)

        out = jax.block_until_ready(
            conditional_layer_norm(x, condition, params, epsilon=eps))
        ref = _reference(x, condition, params, eps)

        assert out.shape == (B, S, H) and out.dtype == jnp.dtype(dt)
        assert jnp.allclose(out.astype(jnp.float32), ref.astype(jnp.float32),
                            atol=atol, rtol=1e-3), f"mismatch for {(B, S, H)} {dt}"

    print("KERNEL_OK")
</pallas_src>

<mosaic_0001>
module attributes {stable_mosaic.version = 11 : i64} {
  func.func @_cln_kernel(%arg0: i32, %arg1: i32, %arg2: memref<1x8x32xf32, #tpu.memory_space<vmem>>, %arg3: memref<1x1x32xf32, #tpu.memory_space<vmem>>, %arg4: memref<1x1x32xf32, #tpu.memory_space<vmem>>, %arg5: memref<1x8x32xf32, #tpu.memory_space<vmem>>) attributes {dimension_semantics = [#tpu.dimension_semantics<parallel>, #tpu.dimension_semantics<parallel>], iteration_bounds = array<i64: 2, 1>, scalar_prefetch = 0 : i64, scratch_operands = 0 : i64, tpu.core_type = #tpu.core_type<tc>, window_params = [{transform_indices = @transform_0, window_bounds = array<i64: 1, 8, 32>}, {transform_indices = @transform_1, window_bounds = array<i64: 1, 1, 32>}, {transform_indices = @transform_2, window_bounds = array<i64: 1, 1, 32>}, {transform_indices = @transform_3, window_bounds = array<i64: 1, 8, 32>}]} {
    %c0 = arith.constant 0 : index
    %c0_0 = arith.constant 0 : index
    %c0_1 = arith.constant 0 : index
    %0 = vector.load %arg2[%c0, %c0_0, %c0_1] : memref<1x8x32xf32, #tpu.memory_space<vmem>>, vector<1x8x32xf32>
    %cst = arith.constant dense<0.000000e+00> : vector<1x8xf32>
    %1 = vector.multi_reduction <add>, %0, %cst [2] : vector<1x8x32xf32> to vector<1x8xf32>
    %2 = vector.shape_cast %1 : vector<1x8xf32> to vector<1x8x1xf32>
    %cst_2 = arith.constant 3.125000e-02 : f32
    %3 = vector.broadcast %cst_2 : f32 to vector<1x8x1xf32>
    %4 = arith.mulf %2, %3 : vector<1x8x1xf32>
    %c0_3 = arith.constant 0 : index
    %c0_4 = arith.constant 0 : index
    %c0_5 = arith.constant 0 : index
    %5 = vector.load %arg2[%c0_3, %c0_4, %c0_5] : memref<1x8x32xf32, #tpu.memory_space<vmem>>, vector<1x8x32xf32>
    %6 = vector.broadcast %4 : vector<1x8x1xf32> to vector<1x8x32xf32>
    %7 = arith.subf %5, %6 : vector<1x8x32xf32>
    %8 = arith.mulf %7, %7 : vector<1x8x32xf32>
    %cst_6 = arith.constant dense<0.000000e+00> : vector<1x8xf32>
    %9 = vector.multi_reduction <add>, %8, %cst_6 [2] : vector<1x8x32xf32> to vector<1x8xf32>
    %10 = vector.shape_cast %9 : vector<1x8xf32> to vector<1x8x1xf32>
    %cst_7 = arith.constant 3.125000e-02 : f32
    %11 = vector.broadcast %cst_7 : f32 to vector<1x8x1xf32>
    %12 = arith.mulf %10, %11 : vector<1x8x1xf32>
    %cst_8 = arith.constant 9.99999974E-6 : f32
    %13 = vector.broadcast %cst_8 : f32 to vector<1x8x1xf32>
    %14 = arith.addf %12, %13 : vector<1x8x1xf32>
    %15 = math.rsqrt %14 : vector<1x8x1xf32>
    %16 = vector.broadcast %15 : vector<1x8x1xf32> to vector<1x8x32xf32>
    %17 = arith.mulf %7, %16 : vector<1x8x32xf32>
    %c0_9 = arith.constant 0 : index
    %c0_10 = arith.constant 0 : index
    %c0_11 = arith.constant 0 : index
    %18 = vector.load %arg3[%c0_9, %c0_10, %c0_11] : memref<1x1x32xf32, #tpu.memory_space<vmem>>, vector<1x1x32xf32>
    %19 = vector.broadcast %18 : vector<1x1x32xf32> to vector<1x8x32xf32>
    %20 = arith.mulf %17, %19 : vector<1x8x32xf32>
    %c0_12 = arith.constant 0 : index
    %c0_13 = arith.constant 0 : index
    %c0_14 = arith.constant 0 : index
    %21 = vector.load %arg4[%c0_12, %c0_13, %c0_14] : memref<1x1x32xf32, #tpu.memory_space<vmem>>, vector<1x1x32xf32>
    %22 = vector.broadcast %21 : vector<1x1x32xf32> to vector<1x8x32xf32>
    %23 = arith.addf %20, %22 : vector<1x8x32xf32>
    %c0_15 = arith.constant 0 : index
    %c0_16 = arith.constant 0 : index
    %c0_17 = arith.constant 0 : index
    %24 = vector.load %arg5[%c0_15, %c0_16, %c0_17] : memref<1x8x32xf32, #tpu.memory_space<vmem>>, vector<1x8x32xf32>
    tpu.vector_store %arg5[%c0_15, %c0_16, %c0_17], %23 {strides = array<i32>} : memref<1x8x32xf32, #tpu.memory_space<vmem>>, vector<1x8x32xf32>,
    return
  }
  func.func @transform_0(%arg0: i32, %arg1: i32) -> (i32, i32, i32) {
    %c0_i32 = arith.constant 0 : i32
    %c0_i32_0 = arith.constant 0 : i32
    return %arg0, %arg1, %c0_i32 : i32, i32, i32
  }
  func.func @transform_1(%arg0: i32, %arg1: i32) -> (i32, i32, i32) {
    %c0_i32 = arith.constant 0 : i32
    %c0_i32_0 = arith.constant 0 : i32
    %c0_i32_1 = arith.constant 0 : i32
    return %arg0, %c0_i32, %c0_i32_0 : i32, i32, i32
  }
  func.func @transform_2(%arg0: i32, %arg1: i32) -> (i32, i32, i32) {
    %c0_i32 = arith.constant 0 : i32
    %c0_i32_0 = arith.constant 0 : i32
    %c0_i32_1 = arith.constant 0 : i32
    return %arg0, %c0_i32, %c0_i32_0 : i32, i32, i32
  }
  func.func @transform_3(%arg0: i32, %arg1: i32) -> (i32, i32, i32) {
    %c0_i32 = arith.constant 0 : i32
    %c0_i32_0 = arith.constant 0 : i32
    return %arg0, %arg1, %c0_i32 : i32, i32, i32
  }
}

</mosaic_0001>

<bundles_post_ra>
// kernel: tpu_custom_call.1
= control target key start
LH: loop header
LB: loop body
LE: loop exit
PB: predicated region body
PF: predicated region fallthrough
CT: control target
= control target key end

     0   :  { %8 = vsyncpa [#allocation3], 0  ;;  %s833_s0 = inlined_call_operand.hbm [shape: f32[2,8,32], index: 0, kind: input, shape index: {}]   ;;  %s834_s1 = inlined_call_operand.hbm [shape: f32[2,1,32], index: 1, kind: input, shape index: {}]   ;;  %s835_s2 = inlined_call_operand.vmem [shape: f32[2,1,32], index: 2, kind: input, shape index: {}]   ;;  %s836_s3 = inlined_call_operand.hbm [shape: f32[2,8,32], index: 3, kind: output, shape index: {}]  }
   0x1   :  { %10 = vsyncpa [#allocation3 + $0x1], 0 }
   0x2   :  { %11 = vsyncpa [#allocation6], 0 }
   0x3   :  { %13 = vsyncpa [#allocation6 + $0x1], 0 }
   0x4   :  { %14 = vsyncpa [#allocation4], 0 }
   0x5   :  { %16 = vsyncpa [#allocation4 + $0x1], 0  ;;  %s657_s12 = smov 0   ;;  %s659_s13 = smov 0  }
   0x6   :  { %s661_s14 = smov 0   ;;  %s663_s15 = smov 0  }
   0x7   :  { %s665_s16 = smov 0   ;;  %s667_s17 = smov 0  }
   0x8 LB: > { %s407_s18 = sadd.s32 4294967295, %s632_s17   ;;  %s408_s19 = sadd.s32 4294967294, %s632_s17   ;;  %s632_s17 = sphi %s667_s17, %s22_s17   ;;  %s628_s16 = sphi %s665_s16, %s848_s16   ;;  %s624_s15 = sphi %s663_s15, %s847_s15   ;;  %s620_s14 = sphi %s661_s14, %s846_s14   ;;  %s616_s13 = sphi %s659_s13, %s845_s13   ;;  %s612_s12 = sphi %s657_s12, %s844_s12  }
   0x9   : > { %s34_s20 = sadd.s32 1, %s628_s16  ;;  %s43_s21 = sadd.s32 1, %s620_s14 }
   0xa   : > { %p36_p0 = scmp.ge.s32.totalorder %s34_s20, 2  ;;  %p50_p1 = scmp.ne.s32.totalorder %s620_s14, %s616_s13 }
   0xb   : > { %p51_p2 = scmp.eq.s32.totalorder %s632_s17, 0  ;;  %p56_p3 = scmp.ne.s32.totalorder %s616_s13, %s612_s12 }
   0xc   : > { %s850_s20 = smov (%p36_p0, %s34_s20), 0  ;;  %p57_p5 = scmp.eq.s32.totalorder %s407_s18, 0 }
   0xd   : > { %p698_p4 = por %p51_p2, %p50_p1  ;;  %s38_s23 = ssub.s32 %s628_s16, %s850_s20 }
   0xe   : > { %p134_p6 = scmp.eq.s32.totalorder %s407_s18, 1  ;;  %p41_p7 = scmp.eq.s32.totalorder %s38_s23, 0 }
   0xf   : > { %p704_p8 = por %p57_p5, %p56_p3  ;;  %p140_p10 = scmp.eq.s32.totalorder %s408_s19, 1 }
  0x10   : > { %p708_p9 = por %p134_p6, %p50_p1  ;;  %p440_p13 = scmp.lt.s32.totalorder %s632_s17, 2 }
  0x11   : > { %s713_s26 = scalar_select %p41_p7, %s620_s14, %s43_s21  }
  0x12   : > { %p715_p11 = por %p140_p10, %p56_p3  ;;  %s722_s28 = sand.u32 1, %s620_s14  }
  0x13   : > { %s411_s29 = sshll.u32 %s722_s28, 3  ;;  %s412_s30 = sshll.u32 %s628_s16, 7 }
  0x14   : > { %s170_s6 = scalar_lea.hbm %s833_s0, %s412_s30  ;;  %s164_s7 = scalar_lea.vmem [#allocation2], %s411_s29 }
  0x15   : > { %s172_s8 = sshll.u32 %s164_s7, 4  ;;  %p731_p0 = pnand %p440_p13, %p698_p4  ;;  %s173_s8 = int_to_ptr.vmem [resolvable:$true] %s172_s8 }
  0x16   : > { %p414_p1 = scmp.ge.s32.totalorder %s632_s17, 1  ;;  %p200_p2 = scmp.lt.s32.totalorder %s632_s17, 3 }
  0x17   : > { %s161_s10 = scalar_lea.sflag [#allocation3], %s722_s28  ;;  %p494_p3 = pneg %p731_p0 }
  0x18   : > { %s505_s11 = scalar_lea.vmem %s173_s8, 128  ;;  %s634_s18 = smov [#allocation2]  }
  0x19   : > { %p506_p5 = scmp.ne.s32.totalorder %s173_s8, %s505_s11  ;;  %s510_s19 = sshll.u32 %s634_s18, 4  ;;  %s511_s19 = int_to_ptr.vmem [resolvable:$false] %s510_s19 }
  0x1a   : > { %s512_s21 = scalar_lea.vmem %s511_s19, 256  ;;  %p513_p4 = scmp.lt.s32.totalorder %s173_s8, %s511_s19 }
  0x1b   : > { %p508_p6 = pnand %p506_p5, %p494_p3  ;;  %p514_p10 = scmp.lt.s32.totalorder %s512_s21, %s505_s11 }
  0x1d   : > { %p509_p7 = pneg %p508_p6  ;;  %p515_p13 = por %p514_p10, %p513_p4 }
  0x1f   : > { %p516_p12 = pnand %p515_p13, %p509_p7 }
  0x21   : > { %519 = shalt.err (!%p516_p12)
}
  0x22   : > { %432 = dma.hbm_to_vmem [thread:$0]  (!%p731_p0), %s170_s6, 128, %s173_s8, %s161_s10  }
  0x23   : > { %p749_p5 = pnand %p414_p1, %p200_p2  ;;  %s413_s23 = sshll.u32 %s628_s16, 4 }
  0x24   : > { %s182_s29 = scalar_lea.vmem [#allocation5], %s722_s28  ;;  %s187_s7 = scalar_lea.hbm %s834_s1, %s413_s23 }
  0x25   : > { %s189_s30 = sshll.u32 %s182_s29, 4  ;;  %s180_s11 = scalar_lea.sflag [#allocation6], %s722_s28  ;;  %s190_s30 = int_to_ptr.vmem [resolvable:$true] %s189_s30 }
  0x26   : > { %s533_s18 = scalar_lea.vmem %s190_s30, 16  ;;  %s635_s6 = smov [#allocation5]  }
  0x27   : > { %p534_p12 = scmp.ne.s32.totalorder %s190_s30, %s533_s18  ;;  %s538_s8 = sshll.u32 %s635_s6, 4  ;;  %s539_s8 = int_to_ptr.vmem [resolvable:$false] %s538_s8 }
  0x28   : > { %s540_s10 = scalar_lea.vmem %s539_s8, 32  ;;  %p541_p1 = scmp.lt.s32.totalorder %s190_s30, %s539_s8 }
  0x29   : > { %p536_p6 = pnand %p534_p12, %p494_p3  ;;  %p542_p2 = scmp.lt.s32.totalorder %s540_s10, %s533_s18 }
  0x2b   : > { %p537_p7 = pneg %p536_p6  ;;  %p543_p4 = por %p542_p2, %p541_p1 }
  0x2d   : > { %p544_p10 = pnand %p543_p4, %p537_p7 }
  0x2f   : > { %547 = shalt.err (!%p544_p10)
}
  0x30   : > { %435 = dma.hbm_to_vmem [thread:$0]  (!%p731_p0), %s187_s7, 16, %s190_s30, %s180_s11  }
  0x31   : > { %204 = sbr.rel (%p749_p5) target bundleno = 379 (0x17b), region = 32  ;;  %s767_s28 = sand.u32 (!%p749_p5), 1, %s616_s13  }
  0x32   : > { %s415_s19 = sshll.u32 (!%p749_p5), %s767_s28, 3  ;;  %s207_s21 = scalar_lea.sflag (!%p749_p5), [#allocation3], %s767_s28 }
  0x33   : > { %s210_s23 = scalar_lea.vmem (!%p749_p5), [#allocation2], %s415_s19 }
  0x36   : > { %599 = dma.done.wait (%p704_p8), %s207_s21, 128  }
  0x37   : > { %601 = vsyncadd (%p704_p8), %s207_s21, 4294967168  ;;  %s216_s9 = scalar_lea.sflag [#allocation6], %s767_s28  ;;  %s218_s22 = scalar_lea.vmem [#allocation5], %s767_s28 }
  0x38   : > { %603 = dma.done.wait (%p704_p8), %s216_s9, 16  }
  0x39   : > { %605 = vsyncadd (%p704_p8), %s216_s9, 4294967280  ;;  %vm252_vm0 = vcmask 261120   ;;  %v251_v0 = vld [vmem:[%s210_s23] sm:$0xff]  ;;  %p248_p8 = scmp.lt.s32.totalorder %s624_s15, 1  ;;  %s420_s5 = sshll.u32 %s624_s15, 7 }
  0x3a   : > { %v253_v1 = vsel %vm252_vm0, %v251_v0, 0.0  ;;  %v417_v11 = vld [vmem:[%s218_s22] ss:$0 sm:$0xff]  ;;  %s247_s7 = scalar_lea.vmem [#allocation7], %s415_s19  ;;  %s296_s8 = scalar_lea.hbm %s836_s3, %s420_s5 }
  0x3b   : > { %254 = vadd.xlane.f32.xlu0 %v253_v1  ;;  %s249_s24 = scalar_select %p248_p8, %s624_s15, 1 }
  0x3c   : > { %s298_s11 = sshll.u32 %s247_s7, 4  ;;  %s284_s10 = scalar_lea.sflag [#allocation4], %s767_s28  ;;  %s299_s11 = int_to_ptr.vmem [resolvable:$true] %s298_s11 }
  0x3d   : > { %s250_s4 = scalar_lea.vmem %s835_s2, %s249_s24  ;;  %s548_s21 = scalar_lea.vmem %s299_s11, 128 }
  0x3e   : > { %v418_v13 = vld [vmem:[%s250_s4] ss:$0 sm:$0xff]  ;;  %p549_p0 = scmp.ne.s32.totalorder %s299_s11, %s548_s21  ;;  %s636_s23 = smov [#allocation7]  }
  0x3f   : > { %s552_s15 = sshll.u32 %s636_s23, 4  ;;  %s553_s15 = int_to_ptr.vmem [resolvable:$false] %s552_s15 }
  0x40   : > { %p550_p3 = pnand %p549_p0, %p708_p9  ;;  %s554_s19 = scalar_lea.vmem %s553_s15, 256 }
  0x41   : > { %p555_p5 = scmp.lt.s32.totalorder %s299_s11, %s553_s15  ;;  %p556_p12 = scmp.lt.s32.totalorder %s554_s19, %s548_s21 }
  0x42   : > { %p551_p13 = pneg %p550_p3 }
  0x43   : > { %p557_p6 = por %p556_p12, %p555_p5 }
  0x45   : > { %p558_p7 = pnand %p557_p6, %p551_p13 }
  0xc4   : > { %v255_v2 = vpop.xlane.xlu0 %254 }
  0xc5   : > { %v256_v3 = vmul.f32 0.03125, %v255_v2 }
  0xc7   : > { %v257_v4 = vsub.f32 %v251_v0, %v256_v3 }
  0xc9   : > { %v258_v5 = vmul.f32 %v257_v4, %v257_v4 }
  0xcb   : > { %v259_v6 = vsel %vm252_vm0, %v258_v5, 0.0 }
  0xcc   : > { %260 = vadd.xlane.f32.xlu0 %v259_v6 }
 0x155   : > { %v261_v7 = vpop.xlane.xlu0 %260 }
 0x156   : > { %v262_v8 = vmul.f32 0.03125, %v261_v7 }
 0x158   : > { %v263_v9 = vadd.f32 1e-05, %v262_v8 }
 0x15a   : > { %490 = vrsqrt.f32 %v263_v9 }
 0x167   : > { %v491_v10 = vpop.eup %490 }
 0x168   : > { %v265_v12 = vmul.f32 %v491_v10, %v257_v4 }
 0x16a   : > { %v273_v14 = vmul.f32 %v417_v11, %v265_v12 }
 0x16c   : > { %v281_v15 = vadd.f32 %v418_v13, %v273_v14 }
 0x16e   : > { %282 = vst.msk [vmem:[%s247_s7] sm:$0xff] %vm252_vm0, %v281_v15 }
 0x16f   : > { %561 = shalt.err (!%p558_p7)
}
 0x170   : > { %s562_s9 = scalar_lea.hbm %s296_s8, 128  ;;  %s566_s24 = scalar_lea.hbm %s836_s3, 256 }
 0x171   : > { %p563_p1 = scmp.ne.s32.totalorder %s296_s8, %s562_s9  ;;  %p567_p10 = scmp.lt.s32.totalorder %s296_s8, %s836_s3 }
 0x172   : > { %p568_p8 = scmp.lt.s32.totalorder %s566_s24, %s562_s9 }
 0x173   : > { %p564_p2 = pnand %p563_p1, %p708_p9 }
 0x174   : > { %p569_p0 = por %p568_p8, %p567_p10 }
 0x175   : > { %p565_p4 = pneg %p564_p2 }
 0x177   : > { %p570_p3 = pnand %p569_p0, %p565_p4 }
 0x179   : > { %573 = shalt.err (!%p570_p3)
}
 0x17a   : > { %427 = dma.vmem_to_hbm [thread:$0]  (%p708_p9), %s299_s11, 128, %s296_s8, %s284_s10  }
 0x17b PF: > { %s310_s4 = sand.u32 1, %s612_s12   ;;  %p843_p13 = scmp.ge.s32.totalorder %s632_s17, 2 }
 0x17c   : > { %s311_s5 = scalar_lea.sflag [#allocation4], %s310_s4 }
 0x17d   : > { %p437_p5 = pnand %p843_p13, %p715_p11 }
 0x17f   : > { %p438_p12 = pneg %p437_p5 }
 0x181   : > { %607 = dma.done.wait (%p438_p12), %s311_s5, 128  }
 0x182   : > { %609 = vsyncadd (%p438_p12), %s311_s5, 4294967168  ;;  %s22_s17 = sadd.s32 1, %s632_s17   ;;  %s844_s12 = smov %s616_s13 }
 0x183   : > { %p19_p6 = scmp.ge.s32.totalorder %s22_s17, 4   ;;  %s845_s13 = smov %s620_s14 }
 0x184   : > { %s846_s14 = smov %s713_s26  ;;  %s847_s15 = smov %s628_s16 }
 0x185   : > { %s848_s16 = smov %s850_s20  ;;  %21 = sbr.rel (!%p19_p6) target bundleno = 8 (0x8), region = 93 }
 0x18a   :  { %316 = vsyncpa [#allocation3], 1 }
 0x18b   :  { %318 = vsyncpa [#allocation3 + $0x1], 1 }
 0x18c   :  { %319 = vsyncpa [#allocation6], 1 }
 0x18d   :  { %321 = vsyncpa [#allocation6 + $0x1], 1 }
 0x18e   :  { %322 = vsyncpa [#allocation4], 1 }
 0x18f   :  { %324 = vsyncpa [#allocation4 + $0x1], 1 }

</bundles_post_ra>
